<compile_context>
chip_gen: v5e
topology: v5e:2x2
jax: 0.10.0
libtpu: 0.0.40
codegen_flags: <defaults>
</compile_context>

<pallas_src>
import functools
import math

import jax
import jax.numpy as jnp
from jax import lax
from jax.experimental import pallas as pl
from jax.experimental.pallas import tpu as pltpu

MASK_VAL = -100000000.0  # the reference's additive key mask value


# ----------------------------- Pallas kernels ------------------------------ #

def _proj_kernel(x_ref, w_ref, q_ref, k_ref, v_ref, *, cqk, cv, mxu_dtype):
    """Fused 1x1-conv projections, channels-first, one stacked matmul.

    x_ref: (1, Cin, TS); w_ref: (Cv+2*Cqk, Cin) already in mxu_dtype, rows
    ordered [V; Q; K]; outputs: q/k (1, Cqk, TS), v (1, Cv+1, TS) where the
    extra V row is all ones (used to fold the softmax denominator into the
    attention P@V matmul).
    """
    x = x_ref[0].astype(mxu_dtype)                                   # (Cin, TS)
    y = jnp.dot(w_ref[...], x, preferred_element_type=jnp.float32)   # (Cv+2Cqk, TS)
    ts = y.shape[1]
    v_ref[0] = jnp.concatenate(
        [y[:cv], jnp.ones((1, ts), jnp.float32)], axis=0).astype(v_ref.dtype)
    q_ref[0] = y[cv:cv + cqk].astype(q_ref.dtype)
    k_ref[0] = y[cv + cqk:].astype(k_ref.dtype)


def _attn_kernel(q_ref, k_ref, v_ref, o_ref, m_sc, acc_sc, *,
                 n_odd, mask_val, mxu_dtype, exp_dtype, approx_recip):
    """Flash-style attention over only the H*W 'real' (even/even) keys.

    q_ref: (1, Cqk, TQ)   queries, channels-first (queries in lanes)
    k_ref: (1, Cqk, TK)   keys,    channels-first (keys in lanes)
    v_ref: (1, Cv+1, TK)  values,  channels-first; last row is all ones
    o_ref: (1, Cv, TQ)    output tile, channels-first (lane-dense)
    scratch: m_sc (1, TQ) running max, acc_sc (Cv+1, TQ) accumulator whose
    last row is the softmax denominator l (both f32).

    The reference's 3*H*W zero-upsampled + masked key positions all share the
    logit mask_val * sum_c(q_c) and a zero value row; they are folded into the
    online-softmax state at the first key step, reproducing the reference
    softmax exactly without materializing them.
    """
    ki = pl.program_id(2)
    q = q_ref[0]                                                     # (Cqk, TQ)
    cv = o_ref.shape[1]
    tq = acc_sc.shape[1]

    @pl.when(ki == 0)
    def _():
        odd_logit = mask_val * jnp.sum(q.astype(jnp.float32), axis=0,
                                       keepdims=True)                # (1, TQ)
        m_sc[...] = odd_logit
        # acc rows 0..Cv-1 = weighted-value accumulator (zeros); last row = l,
        # initialized to n_odd (each masked key contributes exp(odd - m) = 1).
        acc_sc[...] = jnp.concatenate(
            [jnp.zeros((cv, tq), jnp.float32),
             jnp.full((1, tq), float(n_odd), jnp.float32)], axis=0)

    k = k_ref[0]                                                     # (Cqk, TK)
    v = v_ref[0]                                                     # (Cv+1, TK)

    # Transposed scores: s_t[m, n] = sum_c k[c, m] * q[c, n]  -> (TK, TQ).
    s_t = lax.dot_general(
        k.astype(mxu_dtype), q.astype(mxu_dtype),
        dimension_numbers=(((0,), (0,)), ((), ())),
        preferred_element_type=jnp.float32)

    m_prev = m_sc[...]
    m_new = jnp.maximum(m_prev, jnp.max(s_t, axis=0, keepdims=True)) # (1, TQ)
    alpha = jnp.exp(m_prev - m_new)                                  # f32
    p_t = jnp.exp((s_t - m_new).astype(exp_dtype))                   # (TK, TQ)
    # Softmax denominator rides along in the last accumulator row (ones row of V).
    acc_sc[...] = alpha * acc_sc[...] + jnp.dot(
        v.astype(mxu_dtype), p_t.astype(mxu_dtype),
        preferred_element_type=jnp.float32)                          # (Cv+1, TQ)
    m_sc[...] = m_new

    @pl.when(ki == pl.num_programs(2) - 1)
    def _():
        inv_l = pl.reciprocal(acc_sc[cv:, :], approx=approx_recip)   # (1, TQ)
        o_ref[0] = (acc_sc[:cv, :] * inv_l).astype(o_ref.dtype)


# ----------------------------- pallas_call wrappers ------------------------- #

def _pick_tile(n, target):
    """Largest tile <= target that is either the full dim or a multiple of 128
    dividing n (keeps BlockSpec last-two-dims constraints satisfied)."""
    # TODO(synk): for large non-128-divisible dims this falls back to one full
    # tile; a padded/remainder grid would be needed to bound VMEM there.
    if n <= target:
        return n
    t = (min(target, n) // 128) * 128
    while t >= 128:
        if n % t == 0:
            return t
        t -= 128
    return n


def project_qkv(x_cf, w_stacked, *, cqk, cv, tile_s=1024,
                mxu_dtype=jnp.bfloat16, store_dtype=None):
    """x_cf: (B, Cin, HW); w_stacked: (Cv+2*Cqk, Cin) rows ordered [V; Q; K],
    already cast to mxu_dtype.  Returns channels-first Q, K (B, Cqk, HW) and
    V_ext (B, Cv+1, HW) whose last row is ones, all in store_dtype."""
    B, Cin, HW = x_cf.shape
    store_dtype = mxu_dtype if store_dtype is None else store_dtype
    Cout = w_stacked.shape[0]
    ts = _pick_tile(HW, tile_s)
    kernel = functools.partial(_proj_kernel, cqk=cqk, cv=cv, mxu_dtype=mxu_dtype)
    return pl.pallas_call(
        kernel,
        out_shape=(
            jax.ShapeDtypeStruct((B, cqk, HW), store_dtype),      # Q
            jax.ShapeDtypeStruct((B, cqk, HW), store_dtype),      # K
            jax.ShapeDtypeStruct((B, cv + 1, HW), store_dtype),   # V + ones row
        ),
        grid=(B, HW // ts),
        in_specs=[
            pl.BlockSpec((1, Cin, ts), lambda b, s: (b, 0, s)),
            pl.BlockSpec((Cout, Cin), lambda b, s: (0, 0)),
        ],
        out_specs=(
            pl.BlockSpec((1, cqk, ts), lambda b, s: (b, 0, s)),
            pl.BlockSpec((1, cqk, ts), lambda b, s: (b, 0, s)),
            pl.BlockSpec((1, cv + 1, ts), lambda b, s: (b, 0, s)),
        ),
        compiler_params=pltpu.CompilerParams(
            dimension_semantics=("parallel", "parallel")),
    )(x_cf, w_stacked)


def attention(q_cf, k_cf, v_ext, *, n_odd, tile_q=512, tile_k=None,
              mask_val=MASK_VAL, mxu_dtype=jnp.bfloat16, exp_dtype=None,
              out_dtype=jnp.float32, vmem_limit_bytes=None):
    """q_cf: (B, Cqk, N); k_cf: (B, Cqk, HW); v_ext: (B, Cv+1, HW) with a ones
    last row -> (B, Cv, N).  All channels-first.  tile_k=None uses the full HW
    key extent (single key step; K/V stay VMEM-resident across query tiles)."""
    B, Cqk, N = q_cf.shape
    HW = k_cf.shape[2]
    Cv1 = v_ext.shape[1]
    Cv = Cv1 - 1
    exp_dtype = mxu_dtype if exp_dtype is None else exp_dtype   # f32 on v5e
    approx_recip = (jnp.dtype(mxu_dtype) == jnp.dtype(jnp.bfloat16))

    tq = _pick_tile(N, tile_q)
    # v7x megacore: keep the parallel grid >= 2 so both TensorCores get work.
    while (B * (N // tq) < 2 and tq >= 256 and (tq // 2) % 128 == 0
           and N % (tq // 2) == 0):
        tq //= 2
    tk = HW if tile_k is None else _pick_tile(HW, tile_k)

    # Raise the scoped-VMEM limit only if the tile estimate needs it (relevant
    # when enlarging tiles, esp. on v7x's 64 MiB physical VMEM).
    if vmem_limit_bytes is None:
        in_b = jnp.dtype(q_cf.dtype).itemsize
        est = 2 * (Cqk * tq + Cqk * tk + Cv1 * tk) * in_b      # dbl-buffered inputs
        est += 2 * Cv * tq * jnp.dtype(out_dtype).itemsize     # dbl-buffered output
        est += (tq + Cv1 * tq) * 4                             # scratch
        est += 3 * tk * tq * 4                                 # s_t / p_t temps
        if est > 28 * 1024 * 1024:
            vmem_limit_bytes = min(int(est * 1.5), 64 * 1024 * 1024)

    kernel = functools.partial(_attn_kernel, n_odd=n_odd, mask_val=mask_val,
                               mxu_dtype=mxu_dtype, exp_dtype=exp_dtype,
                               approx_recip=approx_recip)
    return pl.pallas_call(
        kernel,
        out_shape=jax.ShapeDtypeStruct((B, Cv, N), out_dtype),
        grid=(B, N // tq, HW // tk),
        in_specs=[
            pl.BlockSpec((1, Cqk, tq), lambda b, qi, ki: (b, 0, qi)),
            pl.BlockSpec((1, Cqk, tk), lambda b, qi, ki: (b, 0, ki)),
            pl.BlockSpec((1, Cv1, tk), lambda b, qi, ki: (b, 0, ki)),
        ],
        out_specs=pl.BlockSpec((1, Cv, tq), lambda b, qi, ki: (b, 0, qi)),
        scratch_shapes=[
            pltpu.VMEM((1, tq), jnp.float32),        # running max m
            pltpu.VMEM((Cv1, tq), jnp.float32),      # accumulator (+ denom row)
        ],
        compiler_params=pltpu.CompilerParams(
            dimension_semantics=("parallel", "parallel", "arbitrary"),
            vmem_limit_bytes=vmem_limit_bytes),
    )(q_cf, k_cf, v_ext)


# ------------------------------- JAX glue ---------------------------------- #

def bilinear_up2_align_corners(x):
    """NCHW bilinear upsample x2 with align_corners=True (matches F.interpolate)."""
    # TODO(synk): gather-based bilinear upsample of the small C/8-channel Q tensor
    # is kept in plain JAX; no clean rectangular-tile Pallas equivalent.
    B, C, H, W = x.shape
    oh, ow = 2 * H, 2 * W
    ys = jnp.arange(oh, dtype=jnp.float32) * (H - 1) / (oh - 1)
    xs = jnp.arange(ow, dtype=jnp.float32) * (W - 1) / (ow - 1)
    y0 = jnp.floor(ys).astype(jnp.int32)
    x0 = jnp.floor(xs).astype(jnp.int32)
    y1 = jnp.minimum(y0 + 1, H - 1)
    x1 = jnp.minimum(x0 + 1, W - 1)
    wy = (ys - y0.astype(jnp.float32))[:, None]          # (oh, 1)
    wx = (xs - x0.astype(jnp.float32))[None, :]          # (1, ow)
    v00 = x[:, :, y0[:, None], x0[None, :]]
    v01 = x[:, :, y0[:, None], x1[None, :]]
    v10 = x[:, :, y1[:, None], x0[None, :]]
    v11 = x[:, :, y1[:, None], x1[None, :]]
    return (v00 * (1 - wy) * (1 - wx) + v01 * (1 - wy) * wx
            + v10 * wy * (1 - wx) + v11 * wy * wx)


def zero_upsample(x):
    """NCHW zero-insertion upsample by 2 (value at even (i, j), zeros elsewhere)."""
    B, C, H, W = x.shape
    z = jnp.zeros((B, C, H, W, 2, 2), x.dtype)
    z = z.at[..., 0, 0].set(x)
    return z.transpose(0, 1, 2, 4, 3, 5).reshape(B, C, 2 * H, 2 * W)


def attention_conv_forward(x, wq, wk, wv, *, tile_q=512, tile_k=None, tile_s=1024,
                           mxu_dtype=jnp.bfloat16, exp_dtype=None,
                           vmem_limit_bytes=None):
    """x: (B, C, H, W) NCHW; wq/wk: (C//8, C); wv: (C, C) (1x1 conv weights).

    Production defaults: bf16 MXU/storage end-to-end (f32 accumulation),
    resident K/V (tile_k=None).  On v5e pass exp_dtype=jnp.float32 (no bf16 EUP).
    """
    B, C, H, W = x.shape
    Cqk = wq.shape[0]
    HW = H * W
    N = 4 * HW
    store_dtype = mxu_dtype   # Q/K/V storage dtype (halves HBM traffic for bf16)

    # Stacked weights [V; Q; K], pre-cast once (resident across grid steps).
    w_stacked = jnp.concatenate([wv, wq, wk], axis=0).astype(mxu_dtype)

    # Fused 1x1 projections, channels-first (free reshape of NCHW input).
    q_cf, k_cf, v_ext = project_qkv(x.reshape(B, C, HW), w_stacked,
                                    cqk=Cqk, cv=C, tile_s=tile_s,
                                    mxu_dtype=mxu_dtype, store_dtype=store_dtype)

    # Bilinear x2 upsample of Q (align_corners=True) on the small C/8 tensor.
    q_up = bilinear_up2_align_corners(
        q_cf.astype(jnp.float32).reshape(B, Cqk, H, W))
    q_up = q_up.reshape(B, Cqk, N).astype(store_dtype)

    out_cf = attention(q_up, k_cf, v_ext, n_odd=3 * HW,
                       tile_q=tile_q, tile_k=tile_k,
                       mxu_dtype=mxu_dtype, exp_dtype=exp_dtype,
                       out_dtype=x.dtype, vmem_limit_bytes=vmem_limit_bytes)

    # Matches reference: out.view(batch, channels, width*2, height*2)
    return out_cf.reshape(B, C, 2 * W, 2 * H)


def reference_forward(x, wq, wk, wv):
    """Pure-JAX reference (full zero-upsample + mask formulation, no Pallas)."""
    B, C, H, W = x.shape
    Cqk = wq.shape[0]
    q = jnp.einsum('bchw,oc->bohw', x, wq)
    k = jnp.einsum('bchw,oc->bohw', x, wk)
    v = jnp.einsum('bchw,oc->bohw', x, wv)
    q_up = bilinear_up2_align_corners(q)
    k_up = zero_upsample(k)
    v_up = zero_upsample(v)
    ii = jnp.arange(2 * H)[:, None]
    jj = jnp.arange(2 * W)[None, :]
    mask = jnp.where((ii % 2 == 0) & (jj % 2 == 0), 0.0, MASK_VAL).astype(jnp.float32)
    k_up = k_up + mask[None, None]
    N = 4 * H * W
    q_t = q_up.reshape(B, Cqk, N).transpose(0, 2, 1)
    k_m = k_up.reshape(B, Cqk, N)
    v_m = v_up.reshape(B, C, N)
    att = jax.nn.softmax(jnp.einsum('bnc,bcm->bnm', q_t, k_m), axis=-1)
    out = jnp.einsum('bcm,bnm->bcn', v_m, att)
    return out.reshape(B, C, 2 * W, 2 * H)


# ---------------------------------- main ------------------------------------ #

if __name__ == "__main__":
    base = 16          # channels (module requires base >= 8 so base // 8 >= 1)
    B, H, W = 2, 16, 16

    key = jax.random.PRNGKey(0)
    kq, kk, kv, kx = jax.random.split(key, 4)

    # kaiming_normal_(mode='fan_out', nonlinearity='relu') for 1x1 convs:
    # std = sqrt(2 / (out_channels * 1 * 1))
    cqk = base // 8
    wq = jax.random.normal(kq, (cqk, base), dtype=jnp.float32) * math.sqrt(2.0 / cqk)
    wk = jax.random.normal(kk, (cqk, base), dtype=jnp.float32) * math.sqrt(2.0 / cqk)
    wv = jax.random.normal(kv, (base, base), dtype=jnp.float32) * math.sqrt(2.0 / base)

    x = jax.random.normal(kx, (B, base, H, W), dtype=jnp.float32)

    # Strict-accuracy path: f32 MXU/storage, multi-step key reduction
    # (tile_k=128) so the flash-style online-softmax fold is exercised.
    out_f32 = attention_conv_forward(x, wq, wk, wv, tile_q=256, tile_k=128,
                                     mxu_dtype=jnp.float32)
    out_f32 = jax.block_until_ready(out_f32)

    ref = jax.block_until_ready(reference_forward(x, wq, wk, wv))
    assert out_f32.shape == (B, base, 2 * W, 2 * H), out_f32.shape
    max_err = float(jnp.max(jnp.abs(out_f32 - ref)))
    assert jnp.allclose(out_f32, ref, atol=1e-2, rtol=1e-2), max_err

    # Production path: bf16 MXU/storage, single key step with resident K/V.
    # (No strict comparison: bf16 rounding can flip the sign of sum_c(q) near 0,
    #  which the reference's +/-1e8 mask scheme amplifies by construction.)
    out_bf16 = attention_conv_forward(x, wq, wk, wv)
    out_bf16 = jax.block_until_ready(out_bf16)
    assert out_bf16.shape == (B, base, 2 * W, 2 * H), out_bf16.shape
    assert bool(jnp.all(jnp.isfinite(out_bf16)))

    print("KERNEL_OK")
</pallas_src>

<mosaic_0001>
module attributes {stable_mosaic.version = 11 : i64} {
  func.func @_proj_kernel(%arg0: i32, %arg1: i32, %arg2: memref<1x16x256xf32, #tpu.memory_space<vmem>>, %arg3: memref<20x16xf32, #tpu.memory_space<vmem>>, %arg4: memref<1x2x256xf32, #tpu.memory_space<vmem>>, %arg5: memref<1x2x256xf32, #tpu.memory_space<vmem>>, %arg6: memref<1x17x256xf32, #tpu.memory_space<vmem>>) attributes {dimension_semantics = [#tpu.dimension_semantics<parallel>, #tpu.dimension_semantics<parallel>], iteration_bounds = array<i64: 2, 1>, scalar_prefetch = 0 : i64, scratch_operands = 0 : i64, tpu.core_type = #tpu.core_type<tc>, window_params = [{transform_indices = @transform_0, window_bounds = array<i64: 1, 16, 256>}, {pipeline_mode = #tpu.pipeline_mode<synchronous>, transform_indices = @transform_1, window_bounds = array<i64: 20, 16>}, {transform_indices = @transform_2, window_bounds = array<i64: 1, 2, 256>}, {transform_indices = @transform_3, window_bounds = array<i64: 1, 2, 256>}, {transform_indices = @transform_4, window_bounds = array<i64: 1, 17, 256>}]} {
    %c0 = arith.constant 0 : index
    %c0_0 = arith.constant 0 : index
    %c0_1 = arith.constant 0 : index
    %0 = vector.load %arg2[%c0, %c0_0, %c0_1] : memref<1x16x256xf32, #tpu.memory_space<vmem>>, vector<1x16x256xf32>
    %1 = vector.shape_cast %0 : vector<1x16x256xf32> to vector<16x256xf32>
    %c0_2 = arith.constant 0 : index
    %c0_3 = arith.constant 0 : index
    %2 = vector.load %arg3[%c0_2, %c0_3] : memref<20x16xf32, #tpu.memory_space<vmem>>, vector<20x16xf32>
    %cst = arith.constant dense<0.000000e+00> : vector<20x256xf32>
    %3 = tpu.matmul %2, %1, %cst {dimension_numbers = #tpu.dot_dimension_numbers<[1], [0], [0], [1], [0, 0, 1, 1], [], []>} : vector<20x16xf32>, vector<16x256xf32>, vector<20x256xf32> -> vector<20x256xf32>
    %4 = vector.extract_strided_slice %3 {offsets = [0, 0], sizes = [16, 256], strides = [1, 1]} : vector<20x256xf32> to vector<16x256xf32>
    %cst_4 = arith.constant 1.000000e+00 : f32
    %5 = vector.broadcast %cst_4 : f32 to vector<1x256xf32>
    %6 = tpu.concatenate %4, %5 in 0 : vector<16x256xf32>, vector<1x256xf32> -> vector<17x256xf32>
    %c0_5 = arith.constant 0 : index
    %c0_6 = arith.constant 0 : index
    %c0_7 = arith.constant 0 : index
    %7 = vector.load %arg6[%c0_5, %c0_6, %c0_7] : memref<1x17x256xf32, #tpu.memory_space<vmem>>, vector<1x17x256xf32>
    %8 = vector.shape_cast %7 : vector<1x17x256xf32> to vector<17x256xf32>
    %9 = vector.shape_cast %6 : vector<17x256xf32> to vector<1x17x256xf32>
    tpu.vector_store %arg6[%c0_5, %c0_6, %c0_7], %9 {strides = array<i32>} : memref<1x17x256xf32, #tpu.memory_space<vmem>>, vector<1x17x256xf32>,
    %10 = vector.extract_strided_slice %3 {offsets = [16, 0], sizes = [2, 256], strides = [1, 1]} : vector<20x256xf32> to vector<2x256xf32>
    %c0_8 = arith.constant 0 : index
    %c0_9 = arith.constant 0 : index
    %c0_10 = arith.constant 0 : index
    %11 = vector.load %arg4[%c0_8, %c0_9, %c0_10] : memref<1x2x256xf32, #tpu.memory_space<vmem>>, vector<1x2x256xf32>
    %12 = vector.shape_cast %11 : vector<1x2x256xf32> to vector<2x256xf32>
    %13 = vector.shape_cast %10 : vector<2x256xf32> to vector<1x2x256xf32>
    tpu.vector_store %arg4[%c0_8, %c0_9, %c0_10], %13 {strides = array<i32>} : memref<1x2x256xf32, #tpu.memory_space<vmem>>, vector<1x2x256xf32>,
    %14 = vector.extract_strided_slice %3 {offsets = [18, 0], sizes = [2, 256], strides = [1, 1]} : vector<20x256xf32> to vector<2x256xf32>
    %c0_11 = arith.constant 0 : index
    %c0_12 = arith.constant 0 : index
    %c0_13 = arith.constant 0 : index
    %15 = vector.load %arg5[%c0_11, %c0_12, %c0_13] : memref<1x2x256xf32, #tpu.memory_space<vmem>>, vector<1x2x256xf32>
    %16 = vector.shape_cast %15 : vector<1x2x256xf32> to vector<2x256xf32>
    %17 = vector.shape_cast %14 : vector<2x256xf32> to vector<1x2x256xf32>
    tpu.vector_store %arg5[%c0_11, %c0_12, %c0_13], %17 {strides = array<i32>} : memref<1x2x256xf32, #tpu.memory_space<vmem>>, vector<1x2x256xf32>,
    return
  }
  func.func @transform_0(%arg0: i32, %arg1: i32) -> (i32, i32, i32) {
    %c0_i32 = arith.constant 0 : i32
    %c0_i32_0 = arith.constant 0 : i32
    return %arg0, %c0_i32, %arg1 : i32, i32, i32
  }
  func.func @transform_1(%arg0: i32, %arg1: i32) -> (i32, i32) {
    %c0_i32 = arith.constant 0 : i32
    %c0_i32_0 = arith.constant 0 : i32
    %c0_i32_1 = arith.constant 0 : i32
    return %c0_i32, %c0_i32_0 : i32, i32
  }
  func.func @transform_2(%arg0: i32, %arg1: i32) -> (i32, i32, i32) {
    %c0_i32 = arith.constant 0 : i32
    %c0_i32_0 = arith.constant 0 : i32
    return %arg0, %c0_i32, %arg1 : i32, i32, i32
  }
  func.func @transform_3(%arg0: i32, %arg1: i32) -> (i32, i32, i32) {
    %c0_i32 = arith.constant 0 : i32
    %c0_i32_0 = arith.constant 0 : i32
    return %arg0, %c0_i32, %arg1 : i32, i32, i32
  }
  func.func @transform_4(%arg0: i32, %arg1: i32) -> (i32, i32, i32) {
    %c0_i32 = arith.constant 0 : i32
    %c0_i32_0 = arith.constant 0 : i32
    return %arg0, %c0_i32, %arg1 : i32, i32, i32
  }
}

</mosaic_0001>

<bundles_post_ra>
// kernel: tpu_custom_call.1
= control target key start
LH: loop header
LB: loop body
LE: loop exit
PB: predicated region body
PF: predicated region fallthrough
CT: control target
= control target key end

     0   :  { %10 = vsyncpa [#allocation3], 0  ;;  %s1001_s0 = inlined_call_operand.hbm [shape: f32[2,16,256], index: 0, kind: input, shape index: {}]   ;;  %s1002_s1 = inlined_call_operand.vmem [shape: f32[20,16], index: 1, kind: input, shape index: {}]   ;;  %s1003_s2 = inlined_call_operand.hbm [shape: f32[2,2,256], index: 2, kind: output, shape index: {0}]   ;;  %s1004_s3 = inlined_call_operand.hbm [shape: f32[2,2,256], index: 3, kind: output, shape index: {1}]   ;;  %s1005_s4 = inlined_call_operand.vmem [shape: f32[2,17,256], index: 4, kind: output, shape index: {2}]  }
   0x1   :  { %12 = vsyncpa [#allocation3 + $0x1], 0 }
   0x2   :  { %13 = vsyncpa [#allocation4], 0 }
   0x3   :  { %15 = vsyncpa [#allocation4 + $0x1], 0 }
   0x4   :  { %16 = vsyncpa [#allocation7], 0 }
   0x5   :  { %18 = vsyncpa [#allocation7 + $0x1], 0  ;;  %s852_s15 = smov 0   ;;  %s854_s16 = smov 0  }
   0x6   :  { %s856_s17 = smov 0   ;;  %s858_s18 = smov 0  }
   0x7   :  { %s860_s19 = smov 0   ;;  %s862_s20 = smov 0  }
   0x8 LB: > { %s574_s21 = sadd.s32 4294967295, %s822_s20   ;;  %s575_s22 = sadd.s32 4294967294, %s822_s20   ;;  %s822_s20 = sphi %s862_s20, %s24_s20   ;;  %s818_s19 = sphi %s860_s19, %s1014_s19   ;;  %s814_s18 = sphi %s858_s18, %s1013_s18   ;;  %s810_s17 = sphi %s856_s17, %s1012_s17   ;;  %s806_s16 = sphi %s854_s16, %s1011_s16   ;;  %s802_s15 = sphi %s852_s15, %s1010_s15  }
   0x9   : > { %s36_s23 = sadd.s32 1, %s818_s19  ;;  %s45_s24 = sadd.s32 1, %s810_s17 }
   0xa   : > { %p38_p0 = scmp.ge.s32.totalorder %s36_s23, 2  ;;  %p52_p1 = scmp.ne.s32.totalorder %s810_s17, %s806_s16 }
   0xb   : > { %p53_p2 = scmp.eq.s32.totalorder %s822_s20, 0  ;;  %p58_p3 = scmp.ne.s32.totalorder %s806_s16, %s802_s15 }
   0xc   : > { %s1016_s23 = smov (%p38_p0, %s36_s23), 0  ;;  %p59_p5 = scmp.eq.s32.totalorder %s574_s21, 0 }
   0xd   : > { %p893_p4 = por %p53_p2, %p52_p1  ;;  %s40_s26 = ssub.s32 %s818_s19, %s1016_s23 }
   0xe   : > { %p105_p6 = scmp.eq.s32.totalorder %s574_s21, 1  ;;  %p43_p7 = scmp.eq.s32.totalorder %s40_s26, 0 }
   0xf   : > { %p899_p8 = por %p59_p5, %p58_p3  ;;  %p111_p10 = scmp.eq.s32.totalorder %s575_s22, 1 }
  0x10   : > { %p903_p9 = por %p105_p6, %p52_p1  ;;  %p577_p12 = scmp.ge.s32.totalorder %s822_s20, 2 }
  0x11   : > { %s908_s29 = scalar_select %p43_p7, %s810_s17, %s45_s24  }
  0x12   : > { %p910_p11 = por %p111_p10, %p58_p3  ;;  %p625_p13 = scmp.lt.s32.totalorder %s822_s20, 2 }
  0x13   : > { %s190_s5 = sand.u32 1, %s810_s17   ;;  %s600_s7 = sshll.u32 %s818_s19, 5 }
  0x14   : > { %s578_s6 = sshll.u32 %s190_s5, 5  ;;  %s201_s10 = scalar_lea.hbm %s1001_s0, %s600_s7 }
  0x15   : > { %s194_s11 = scalar_lea.vmem [#allocation2], %s578_s6  ;;  %s202_s13 = sshll.u32 %s201_s10, 4  ;;  %s203_s13 = int_to_ptr.hbm [resolvable:$true] %s202_s13 }
  0x16   : > { %s204_s12 = sshll.u32 %s194_s11, 4  ;;  %p615_p0 = pnand %p625_p13, %p893_p4  ;;  %s205_s12 = int_to_ptr.vmem [resolvable:$true] %s204_s12 }
  0x17   : > { %p581_p1 = scmp.ge.s32.totalorder %s822_s20, 1  ;;  %s191_s14 = scalar_lea.sflag [#allocation3], %s190_s5 }
  0x18   : > { %s824_s21 = smov 256   ;;  %s825_s22 = smov 16  }
  0x19   : > { %617 = dma.hbm_to_vmem [thread:$0]  (!%p615_p0), %s203_s13, 512, %s205_s12, %s191_s14, %s824_s21, %s824_s21, %s825_s22  }
  0x1a   : > { %p212_p2 = scmp.lt.s32.totalorder %s822_s20, 3 }
  0x1c   : > { %p213_p3 = pnand %p581_p1, %p212_p2 }
  0x1d   : > { %s926_s24 = sand.u32 (!%p213_p3), 1, %s806_s16  }
  0x1e   : > { %216 = sbr.rel (%p213_p3) target bundleno = 198 (0xc6), region = 28  ;;  %s582_s26 = sshll.u32 (!%p213_p3), %s926_s24, 5 }
  0x1f   : > { %s219_s6 = scalar_lea.sflag (!%p213_p3), [#allocation3], %s926_s24  ;;  %s222_s7 = scalar_lea.vmem (!%p213_p3), [#allocation2], %s582_s26 }
  0x23   : > { %789 = dma.done.wait (%p899_p8), %s219_s6, 512  }
  0x24   : > { %791 = vsyncadd (%p899_p8), %s219_s6, 4294966784  ;;  %v277_v0 = vld [vmem:[%s222_s7 + $0x10] sm:$0xff]  ;;  %v278_v1 = vld [vmem:[%s222_s7 + $0x18] sm:$0xff]  ;;  %vm282_vm0 = vcmask 130048   ;;  %p266_p4 = scmp.lt.s32.totalorder %s814_s18, 1  ;;  %v826_v7 = vmov 1.0  }
  0x25   : > { %v275_v2 = vld [vmem:[%s222_s7] sm:$0xff]  ;;  %603 = vmatpush.msra.mxu2 %v277_v0  ;;  %605 = vmatpush.msra.mxu3 %v278_v1  ;;  %v276_v3 = vld [vmem:[%s222_s7 + $0x8] sm:$0xff]  ;;  %v279_v5 = vld [vmem:[%s1002_s1] sm:$0xff]  ;;  %s601_s22 = sshll.u32 %s814_s18, 2  ;;  %s583_s26 = sshll.u32 %s926_s24, 2  ;;  %vm353_vm1 = vcmask 1041408  }
  0x26   : > { %v280_v4 = vld [vmem:[%s1002_s1 + $0x8] sm:$0xff]  ;;  %306 = vmatpush.msra.mxu0 %v277_v0  ;;  %332 = vmatpush.msra.mxu1 %v278_v1  ;;  %v281_v6 = vld [vmem:[%s1002_s1 + $0x10] sm:$0xf]  ;;  %s267_s11 = scalar_select %p266_p4, %s814_s18, 1 }
  0x27   : > { %604 = vmatpush.msra.mxu2 %v275_v2  ;;  %606 = vmatpush.msra.mxu3 %v276_v3  ;;  %s391_s25 = scalar_lea.hbm %s1003_s2, %s601_s22  ;;  %s243_s5 = scalar_lea.vmem [#allocation5], %s583_s26 }
  0x28   : > { %587 = vmatmul.msk.f32.vlgmr.msra.gmra.mxu2 %vm282_vm0, %v280_v4  ;;  %590 = vmatmul.msk.f32.vlgmr.msra.gmra.mxu3 %vm282_vm0, %v280_v4  ;;  %s607_s12 = smul.u32 48, %s267_s11  ;;  %s393_s8 = sshll.u32 %s243_s5, 4  ;;  %s394_s8 = int_to_ptr.vmem [resolvable:$true] %s393_s8 }
  0x29   : > { %307 = vmatpush.msra.mxu0 %v275_v2  ;;  %333 = vmatpush.msra.mxu1 %v276_v3  ;;  %s395_s27 = sshll.u32 %s391_s25, 4  ;;  %s408_s18 = scalar_lea.hbm %s1004_s3, %s601_s22  ;;  %s396_s27 = int_to_ptr.hbm [resolvable:$true] %s395_s27 }
  0x2a   : > { %586 = vmatmul.msk.f32.vlgmr.msra.gmra.mxu0 %vm282_vm0, %v279_v5  ;;  %589 = vmatmul.msk.f32.vlgmr.msra.gmra.mxu1 %vm282_vm0, %v279_v5  ;;  %s273_s21 = scalar_lea.vmem %s1005_s4, %s607_s12  ;;  %s250_s11 = scalar_lea.vmem [#allocation6], %s583_s26 }
  0x2b   : > { %348 = vst [vmem:[%s273_s21 + $0x20] sm:$0x1] %v826_v7  ;;  %s410_s12 = sshll.u32 %s250_s11, 4  ;;  %s412_s13 = sshll.u32 %s408_s18, 4  ;;  %s411_s12 = int_to_ptr.vmem [resolvable:$true] %s410_s12  ;;  %s413_s13 = int_to_ptr.hbm [resolvable:$true] %s412_s13 }
  0x2c   : > { %349 = vst [vmem:[%s273_s21 + $0x28] sm:$0x1] %v826_v7  ;;  %s364_s14 = scalar_lea.sflag [#allocation4], %s926_s24  ;;  %s728_s22 = scalar_lea.hbm %s1003_s2, 8 }
  0x30   : > { %588 = vmatmul.msk.f32.gmra.mxu2 %vm282_vm0, %v281_v6  ;;  %591 = vmatmul.msk.f32.gmra.mxu3 %vm282_vm0, %v281_v6 }
  0xa7   : > { %v309_v8 = vpop.f32.mrf.mxu0  ;;  %v335_v9 = vpop.f32.mrf.mxu1 }
  0xa8   : > { %344 = vst [vmem:[%s273_s21] sm:$0xff] %v309_v8 }
  0xa9   : > { %345 = vst [vmem:[%s273_s21 + $0x8] sm:$0xff] %v335_v9 }
  0xab   : > { %v312_v10 = vpop.f32.mrf.mxu2  ;;  %v338_v11 = vpop.f32.mrf.mxu3 }
  0xac   : > { %346 = vst [vmem:[%s273_s21 + $0x10] sm:$0xff] %v312_v10 }
  0xad   : > { %347 = vst [vmem:[%s273_s21 + $0x18] sm:$0xff] %v338_v11  ;;  %s722_s21 = sshra.s32 %s396_s27, 4  ;;  %s723_s21 = int_to_ptr.hbm [resolvable:$true] %s722_s21 }
  0xae   : > { %s724_s6 = scalar_lea.hbm %s723_s21, 4  ;;  %p729_p8 = scmp.lt.s32.totalorder %s723_s21, %s1003_s2 }
  0xaf   : > { %p725_p5 = scmp.ne.s32.totalorder %s723_s21, %s724_s6  ;;  %p730_p10 = scmp.lt.s32.totalorder %s728_s22, %s724_s6 }
  0xb1   : > { %p726_p6 = pnand %p725_p5, %p903_p9  ;;  %p731_p13 = por %p730_p10, %p729_p8 }
  0xb3   : > { %v315_v12 = vpop.f32.mrf.mxu2  ;;  %v341_v13 = vpop.f32.mrf.mxu3  ;;  %p727_p7 = pneg %p726_p6 }
  0xb4   : > { %357 = vst.sshfl [vmem:[#allocation1] sm:$0xff pattern:$0x73625140] %v315_v12  ;;  %v352_v14 = vrot.slane %v341_v13, 6 }
  0xb5   : > { %358 = vst.sshfl [vmem:[#allocation1 + $0x8] sm:$0xff pattern:$0x73625140] %v341_v13  ;;  %p732_p0 = pnand %p731_p13, %p727_p7 }
  0xb6   : > { %v354_v15 = vsel %vm353_vm1, %v315_v12, %v352_v14 }
  0xb7   : > { %356 = vst [vmem:[%s243_s5] sm:$0xf] %v354_v15 }
  0xb8   : > { %735 = shalt.err (!%p732_p0)
}
  0xb9   : > { %610 = dma.vmem_to_hbm [thread:$0]  (%p903_p9), %s394_s8, 64, %s396_s27, %s364_s14  }
  0xba   : > { %s369_s26 = scalar_lea.sflag [#allocation7], %s926_s24  ;;  %s750_s5 = sshra.s32 %s413_s13, 4  ;;  %s751_s5 = int_to_ptr.hbm [resolvable:$true] %s750_s5 }
  0xbb   : > { %s752_s18 = scalar_lea.hbm %s751_s5, 4  ;;  %s756_s7 = scalar_lea.hbm %s1004_s3, 8 }
  0xbc   : > { %v360_v16 = vld [vmem:[#allocation1 + $0x1] ss:$4 sm:$0xff]  ;;  %p753_p1 = scmp.ne.s32.totalorder %s751_s5, %s752_s18  ;;  %p757_p4 = scmp.lt.s32.totalorder %s751_s5, %s1004_s3 }
  0xbd   : > { %362 = vst [vmem:[%s250_s11] sm:$0xf] %v360_v16  ;;  %p758_p5 = scmp.lt.s32.totalorder %s756_s7, %s752_s18 }
  0xbe   : > { %p754_p2 = pnand %p753_p1, %p903_p9 }
  0xbf   : > { %p759_p6 = por %p758_p5, %p757_p4 }
  0xc0   : > { %p755_p3 = pneg %p754_p2 }
  0xc2   : > { %p760_p7 = pnand %p759_p6, %p755_p3 }
  0xc4   : > { %763 = shalt.err (!%p760_p7)
}
  0xc5   : > { %611 = dma.vmem_to_hbm [thread:$0]  (%p903_p9), %s411_s12, 64, %s413_s13, %s369_s26  }
  0xc6 PF: > { %s428_s24 = sand.u32 1, %s802_s15   ;;  %p619_p8 = pnand %p577_p12, %p910_p11 }
  0xc7   : > { %s429_s8 = scalar_lea.sflag [#allocation4], %s428_s24 }
  0xc8   : > { %p620_p10 = pneg %p619_p8 }
  0xca   : > { %793 = dma.done.wait (%p620_p10), %s429_s8, 64  }
  0xcb   : > { %795 = vsyncadd (%p620_p10), %s429_s8, 4294967232  ;;  %s439_s27 = scalar_lea.sflag [#allocation7], %s428_s24 }
  0xcc   : > { %797 = dma.done.wait (%p620_p10), %s439_s27, 64  }
  0xcd   : > { %799 = vsyncadd (%p620_p10), %s439_s27, 4294967232  ;;  %s24_s20 = sadd.s32 1, %s822_s20   ;;  %s1010_s15 = smov %s806_s16 }
  0xce   : > { %p21_p13 = scmp.ge.s32.totalorder %s24_s20, 4   ;;  %s1011_s16 = smov %s810_s17 }
  0xcf   : > { %s1012_s17 = smov %s908_s29  ;;  %s1013_s18 = smov %s818_s19 }
  0xd0   : > { %s1014_s19 = smov %s1016_s23  ;;  %23 = sbr.rel (!%p21_p13) target bundleno = 8 (0x8), region = 103 }
  0xd5   :  { %457 = vsyncpa [#allocation3], 1 }
  0xd6   :  { %459 = vsyncpa [#allocation3 + $0x1], 1 }
  0xd7   :  { %460 = vsyncpa [#allocation4], 1 }
  0xd8   :  { %462 = vsyncpa [#allocation4 + $0x1], 1 }
  0xd9   :  { %463 = vsyncpa [#allocation7], 1 }
  0xda   :  { %465 = vsyncpa [#allocation7 + $0x1], 1 }

</bundles_post_ra>
